<compile_context>
chip_gen: v7x
topology: tpu7x:2x2x1
jax: 0.10.0
libtpu: 0.0.40
codegen_flags: <defaults>
</compile_context>

<pallas_src>
import math

import jax
import jax.numpy as jnp
from jax import lax
from jax.experimental import pallas as pl
from jax.experimental.pallas import tpu as pltpu


def _round_up(n, m):
    return ((n + m - 1) // m) * m


def _rnn_mlp_kernel(x_ref,                       # (T*B, Ep)  time-major rows
                    wih0_ref, whh0_ref, b0_ref,  # layer-0: (Ep,Hp),(Hp,Hp),(1,Hp)
                    w1f_ref, b1_ref,             # layer-1 fused: (2Hp,Hp),(1,Hp)
                    w1_ref, bb1_ref,             # MLP linear 1: (Hp,Mp),(1,Mp)
                    w2t_ref, bb2_ref,            # MLP linear 2: (1,Mp),(1,1)
                    out_ref,                     # (B, 1)
                    xproj_scr):                  # VMEM scratch (T, B, Hp)
    T, B, Hp = xproj_scr.shape

    # --- Hoisted layer-0 input projection: one big MXU matmul, bias folded in.
    xp = (jnp.dot(x_ref[...], wih0_ref[...], preferred_element_type=jnp.float32)
          + b0_ref[...])                                      # (T*B, Hp)
    # Static relayout into per-timestep (B, Hp) tiles (outside the recurrence).
    for t in range(T):
        xproj_scr[t] = xp[t * B:(t + 1) * B, :]

    # Hoist the layer-1 bias broadcast out of the loop (JAX does not CSE it).
    b1_b = jnp.broadcast_to(b1_ref[...], (B, Hp))
    zeros = jnp.zeros((B, Hp), jnp.float32)

    def step(t, carry):
        h1, h2, acc = carry
        xt = xproj_scr[t]                                     # (B, Hp)
        # layer 0: only the recurrent matmul is left on the serial chain
        h1n = jnp.tanh(xt + jnp.dot(h1, whh0_ref[...],
                                    preferred_element_type=jnp.float32))
        # layer 1: fused input+recurrent matmul on concat([h1, h2])
        h12 = jnp.concatenate([h1n, h2], axis=-1)             # (B, 2*Hp)
        h2n = jnp.tanh(jnp.dot(h12, w1f_ref[...],
                               preferred_element_type=jnp.float32) + b1_b)
        return h1n, h2n, acc + h2n

    # T is static -> full unroll gives the LLO scheduler cross-step visibility.
    _, _, acc = lax.fori_loop(0, T, step, (zeros, zeros, zeros), unroll=True)

    # --- Head: mean over time -> Linear -> ReLU -> Linear(., 1)
    rnn_mean = acc * (1.0 / T)                                # (B, Hp)
    hidden = jnp.maximum(
        jnp.dot(rnn_mean, w1_ref[...], preferred_element_type=jnp.float32)
        + bb1_ref[...], 0.0)                                  # (B, Mp)
    # (Mp, 1) matmul replaced by elementwise multiply + lane reduction.
    out_ref[...] = (jnp.sum(hidden * w2t_ref[...], axis=-1, keepdims=True)
                    + bb2_ref[...])                           # (B, 1)


@jax.jit
def baseline_lstm_forward(x, params):
    """x: (B, T, E) float32, batch_first like the PyTorch module."""
    B, T, E = x.shape
    H = params["wih0"].shape[1]
    M = params["w1"].shape[1]

    lane = 128
    Ep = _round_up(E, lane)
    Hp = _round_up(H, lane)
    Mp = _round_up(M, lane)

    # Zero-pad everything to lane-dense tiles; padding is mathematically inert.
    wih0 = jnp.pad(params["wih0"], ((0, Ep - E), (0, Hp - H)))
    whh0 = jnp.pad(params["whh0"], ((0, Hp - H), (0, Hp - H)))
    b0 = jnp.pad(params["b0"], ((0, 0), (0, Hp - H)))
    wih1 = jnp.pad(params["wih1"], ((0, Hp - H), (0, Hp - H)))
    whh1 = jnp.pad(params["whh1"], ((0, Hp - H), (0, Hp - H)))
    w1f = jnp.concatenate([wih1, whh1], axis=0)               # (2*Hp, Hp)
    b1 = jnp.pad(params["b1"], ((0, 0), (0, Hp - H)))
    w1 = jnp.pad(params["w1"], ((0, Hp - H), (0, Mp - M)))
    bb1 = jnp.pad(params["bb1"], ((0, 0), (0, Mp - M)))
    w2t = jnp.pad(params["w2"].T, ((0, 0), (0, Mp - M)))      # (1, Mp)
    bb2 = params["bb2"]                                       # (1, 1)

    # (B, T, E) -> time-major rows: step t occupies rows [t*B, (t+1)*B).
    x2d = jnp.pad(jnp.transpose(x, (1, 0, 2)).reshape(T * B, E),
                  ((0, 0), (0, Ep - E)))

    args = (x2d, wih0, whh0, b0, w1f, b1, w1, bb1, w2t, bb2)
    vmem = pl.BlockSpec(memory_space=pltpu.MemorySpace.VMEM)

    return pl.pallas_call(
        _rnn_mlp_kernel,
        out_shape=jax.ShapeDtypeStruct((B, 1), jnp.float32),
        in_specs=[vmem] * len(args),
        out_specs=vmem,
        scratch_shapes=[pltpu.VMEM((T, B, Hp), jnp.float32)],  # hoisted x @ Wih0
    )(*args)


def init_params(key, embed_dim, hidden_dim, expansion_factor):
    """Deterministic synthetic parameters mirroring the PyTorch module shapes.
    PyTorch stores RNN weights as (H, in); we keep them transposed (in, H).
    The per-layer biases b_ih + b_hh are pre-summed into one (1, H) vector."""
    k = jax.random.split(key, 12)
    s_rnn = 1.0 / math.sqrt(hidden_dim)
    mlp_dim = hidden_dim * expansion_factor

    def u(kk, shape, scale):
        return jax.random.uniform(kk, shape, jnp.float32, -scale, scale)

    params = {
        # RNN layer 0 (input_size = embed_dim)
        "wih0": u(k[0], (embed_dim, hidden_dim), s_rnn),
        "whh0": u(k[1], (hidden_dim, hidden_dim), s_rnn),
        "b0":   u(k[2], (1, hidden_dim), s_rnn) + u(k[3], (1, hidden_dim), s_rnn),
        # RNN layer 1 (input_size = hidden_dim)
        "wih1": u(k[4], (hidden_dim, hidden_dim), s_rnn),
        "whh1": u(k[5], (hidden_dim, hidden_dim), s_rnn),
        "b1":   u(k[6], (1, hidden_dim), s_rnn) + u(k[7], (1, hidden_dim), s_rnn),
        # MLP: Linear(H, 4H) -> ReLU -> Linear(4H, 1)
        "w1":  u(k[8], (hidden_dim, mlp_dim), 1.0 / math.sqrt(hidden_dim)),
        "bb1": u(k[9], (1, mlp_dim), 1.0 / math.sqrt(hidden_dim)),
        "w2":  u(k[10], (mlp_dim, 1), 1.0 / math.sqrt(mlp_dim)),
        "bb2": u(k[11], (1, 1), 1.0 / math.sqrt(mlp_dim)),
    }
    return params


def reference_forward(x, p):
    """Pure-JAX reference reproducing torch semantics (tanh RNN, 2 layers)."""
    B, T, E = x.shape
    H = p["wih0"].shape[1]
    h1 = jnp.zeros((B, H), jnp.float32)
    h2 = jnp.zeros((B, H), jnp.float32)
    outs = []
    for t in range(T):
        xt = x[:, t, :]
        h1 = jnp.tanh(xt @ p["wih0"] + h1 @ p["whh0"] + p["b0"])
        h2 = jnp.tanh(h1 @ p["wih1"] + h2 @ p["whh1"] + p["b1"])
        outs.append(h2)
    rnn_mean = jnp.mean(jnp.stack(outs, axis=1), axis=1)
    hidden = jnp.maximum(rnn_mean @ p["w1"] + p["bb1"], 0.0)
    return hidden @ p["w2"] + p["bb2"]


if __name__ == "__main__":
    # Small shapes consistent with the module's forward: (B, T, embed_dim)
    B, T = 2, 8
    embed_dim, hidden_dim, expansion = 64, 32, 4

    key = jax.random.PRNGKey(0)
    kx, kp = jax.random.split(key)
    x = jax.random.normal(kx, (B, T, embed_dim), jnp.float32)
    params = init_params(kp, embed_dim, hidden_dim, expansion)

    out = baseline_lstm_forward(x, params)
    out = jax.block_until_ready(out)

    ref = reference_forward(x, params)
    assert out.shape == (B, 1)
    assert jnp.allclose(out, ref, atol=1e-4, rtol=1e-4), (out, ref)

    print("KERNEL_OK")
</pallas_src>

<mosaic_0001>
module attributes {stable_mosaic.version = 11 : i64} {
  func.func @_rnn_mlp_kernel(%arg0: memref<16x128xf32, #tpu.memory_space<vmem>>, %arg1: memref<128x128xf32, #tpu.memory_space<vmem>>, %arg2: memref<128x128xf32, #tpu.memory_space<vmem>>, %arg3: memref<1x128xf32, #tpu.memory_space<vmem>>, %arg4: memref<256x128xf32, #tpu.memory_space<vmem>>, %arg5: memref<1x128xf32, #tpu.memory_space<vmem>>, %arg6: memref<128x128xf32, #tpu.memory_space<vmem>>, %arg7: memref<1x128xf32, #tpu.memory_space<vmem>>, %arg8: memref<1x128xf32, #tpu.memory_space<vmem>>, %arg9: memref<1x1xf32, #tpu.memory_space<vmem>>, %arg10: memref<2x1xf32, #tpu.memory_space<vmem>>, %arg11: memref<8x2x128xf32, #tpu.memory_space<vmem>>) attributes {dimension_semantics = [], scalar_prefetch = 0 : i64, scratch_operands = 1 : i64, tpu.core_type = #tpu.core_type<tc>} {
    %c0 = arith.constant 0 : index
    %c0_0 = arith.constant 0 : index
    %0 = vector.load %arg0[%c0, %c0_0] : memref<16x128xf32, #tpu.memory_space<vmem>>, vector<16x128xf32>
    %c0_1 = arith.constant 0 : index
    %c0_2 = arith.constant 0 : index
    %1 = vector.load %arg1[%c0_1, %c0_2] : memref<128x128xf32, #tpu.memory_space<vmem>>, vector<128x128xf32>
    %cst = arith.constant dense<0.000000e+00> : vector<16x128xf32>
    %2 = tpu.matmul %0, %1, %cst {dimension_numbers = #tpu.dot_dimension_numbers<[1], [0], [0], [1], [0, 0, 1, 1], [], []>} : vector<16x128xf32>, vector<128x128xf32>, vector<16x128xf32> -> vector<16x128xf32>
    %c0_3 = arith.constant 0 : index
    %c0_4 = arith.constant 0 : index
    %3 = vector.load %arg3[%c0_3, %c0_4] : memref<1x128xf32, #tpu.memory_space<vmem>>, vector<1x128xf32>
    %4 = vector.broadcast %3 : vector<1x128xf32> to vector<16x128xf32>
    %5 = arith.addf %2, %4 : vector<16x128xf32>
    %6 = vector.extract_strided_slice %5 {offsets = [0, 0], sizes = [2, 128], strides = [1, 1]} : vector<16x128xf32> to vector<2x128xf32>
    %c0_5 = arith.constant 0 : index
    %c0_6 = arith.constant 0 : index
    %c0_7 = arith.constant 0 : index
    %7 = vector.load %arg11[%c0_5, %c0_6, %c0_7] : memref<8x2x128xf32, #tpu.memory_space<vmem>>, vector<1x2x128xf32>
    %8 = vector.shape_cast %7 : vector<1x2x128xf32> to vector<2x128xf32>
    %9 = vector.shape_cast %6 : vector<2x128xf32> to vector<1x2x128xf32>
    tpu.vector_store %arg11[%c0_5, %c0_6, %c0_7], %9 {strides = array<i32>} : memref<8x2x128xf32, #tpu.memory_space<vmem>>, vector<1x2x128xf32>,
    %10 = vector.extract_strided_slice %5 {offsets = [2, 0], sizes = [2, 128], strides = [1, 1]} : vector<16x128xf32> to vector<2x128xf32>
    %c1 = arith.constant 1 : index
    %c0_8 = arith.constant 0 : index
    %c0_9 = arith.constant 0 : index
    %11 = vector.load %arg11[%c1, %c0_8, %c0_9] : memref<8x2x128xf32, #tpu.memory_space<vmem>>, vector<1x2x128xf32>
    %12 = vector.shape_cast %11 : vector<1x2x128xf32> to vector<2x128xf32>
    %13 = vector.shape_cast %10 : vector<2x128xf32> to vector<1x2x128xf32>
    tpu.vector_store %arg11[%c1, %c0_8, %c0_9], %13 {strides = array<i32>} : memref<8x2x128xf32, #tpu.memory_space<vmem>>, vector<1x2x128xf32>,
    %14 = vector.extract_strided_slice %5 {offsets = [4, 0], sizes = [2, 128], strides = [1, 1]} : vector<16x128xf32> to vector<2x128xf32>
    %c2 = arith.constant 2 : index
    %c0_10 = arith.constant 0 : index
    %c0_11 = arith.constant 0 : index
    %15 = vector.load %arg11[%c2, %c0_10, %c0_11] : memref<8x2x128xf32, #tpu.memory_space<vmem>>, vector<1x2x128xf32>
    %16 = vector.shape_cast %15 : vector<1x2x128xf32> to vector<2x128xf32>
    %17 = vector.shape_cast %14 : vector<2x128xf32> to vector<1x2x128xf32>
    tpu.vector_store %arg11[%c2, %c0_10, %c0_11], %17 {strides = array<i32>} : memref<8x2x128xf32, #tpu.memory_space<vmem>>, vector<1x2x128xf32>,
    %18 = vector.extract_strided_slice %5 {offsets = [6, 0], sizes = [2, 128], strides = [1, 1]} : vector<16x128xf32> to vector<2x128xf32>
    %c3 = arith.constant 3 : index
    %c0_12 = arith.constant 0 : index
    %c0_13 = arith.constant 0 : index
    %19 = vector.load %arg11[%c3, %c0_12, %c0_13] : memref<8x2x128xf32, #tpu.memory_space<vmem>>, vector<1x2x128xf32>
    %20 = vector.shape_cast %19 : vector<1x2x128xf32> to vector<2x128xf32>
    %21 = vector.shape_cast %18 : vector<2x128xf32> to vector<1x2x128xf32>
    tpu.vector_store %arg11[%c3, %c0_12, %c0_13], %21 {strides = array<i32>} : memref<8x2x128xf32, #tpu.memory_space<vmem>>, vector<1x2x128xf32>,
    %22 = vector.extract_strided_slice %5 {offsets = [8, 0], sizes = [2, 128], strides = [1, 1]} : vector<16x128xf32> to vector<2x128xf32>
    %c4 = arith.constant 4 : index
    %c0_14 = arith.constant 0 : index
    %c0_15 = arith.constant 0 : index
    %23 = vector.load %arg11[%c4, %c0_14, %c0_15] : memref<8x2x128xf32, #tpu.memory_space<vmem>>, vector<1x2x128xf32>
    %24 = vector.shape_cast %23 : vector<1x2x128xf32> to vector<2x128xf32>
    %25 = vector.shape_cast %22 : vector<2x128xf32> to vector<1x2x128xf32>
    tpu.vector_store %arg11[%c4, %c0_14, %c0_15], %25 {strides = array<i32>} : memref<8x2x128xf32, #tpu.memory_space<vmem>>, vector<1x2x128xf32>,
    %26 = vector.extract_strided_slice %5 {offsets = [10, 0], sizes = [2, 128], strides = [1, 1]} : vector<16x128xf32> to vector<2x128xf32>
    %c5 = arith.constant 5 : index
    %c0_16 = arith.constant 0 : index
    %c0_17 = arith.constant 0 : index
    %27 = vector.load %arg11[%c5, %c0_16, %c0_17] : memref<8x2x128xf32, #tpu.memory_space<vmem>>, vector<1x2x128xf32>
    %28 = vector.shape_cast %27 : vector<1x2x128xf32> to vector<2x128xf32>
    %29 = vector.shape_cast %26 : vector<2x128xf32> to vector<1x2x128xf32>
    tpu.vector_store %arg11[%c5, %c0_16, %c0_17], %29 {strides = array<i32>} : memref<8x2x128xf32, #tpu.memory_space<vmem>>, vector<1x2x128xf32>,
    %30 = vector.extract_strided_slice %5 {offsets = [12, 0], sizes = [2, 128], strides = [1, 1]} : vector<16x128xf32> to vector<2x128xf32>
    %c6 = arith.constant 6 : index
    %c0_18 = arith.constant 0 : index
    %c0_19 = arith.constant 0 : index
    %31 = vector.load %arg11[%c6, %c0_18, %c0_19] : memref<8x2x128xf32, #tpu.memory_space<vmem>>, vector<1x2x128xf32>
    %32 = vector.shape_cast %31 : vector<1x2x128xf32> to vector<2x128xf32>
    %33 = vector.shape_cast %30 : vector<2x128xf32> to vector<1x2x128xf32>
    tpu.vector_store %arg11[%c6, %c0_18, %c0_19], %33 {strides = array<i32>} : memref<8x2x128xf32, #tpu.memory_space<vmem>>, vector<1x2x128xf32>,
    %34 = vector.extract_strided_slice %5 {offsets = [14, 0], sizes = [2, 128], strides = [1, 1]} : vector<16x128xf32> to vector<2x128xf32>
    %c7 = arith.constant 7 : index
    %c0_20 = arith.constant 0 : index
    %c0_21 = arith.constant 0 : index
    %35 = vector.load %arg11[%c7, %c0_20, %c0_21] : memref<8x2x128xf32, #tpu.memory_space<vmem>>, vector<1x2x128xf32>
    %36 = vector.shape_cast %35 : vector<1x2x128xf32> to vector<2x128xf32>
    %37 = vector.shape_cast %34 : vector<2x128xf32> to vector<1x2x128xf32>
    tpu.vector_store %arg11[%c7, %c0_20, %c0_21], %37 {strides = array<i32>} : memref<8x2x128xf32, #tpu.memory_space<vmem>>, vector<1x2x128xf32>,
    %c0_22 = arith.constant 0 : index
    %c0_23 = arith.constant 0 : index
    %38 = vector.load %arg5[%c0_22, %c0_23] : memref<1x128xf32, #tpu.memory_space<vmem>>, vector<1x128xf32>
    %39 = vector.shape_cast %38 : vector<1x128xf32> to vector<1x128xf32>
    %40 = vector.broadcast %39 : vector<1x128xf32> to vector<2x128xf32>
    %cst_24 = arith.constant 0.000000e+00 : f32
    %41 = vector.broadcast %cst_24 : f32 to vector<2x128xf32>
    %c0_i32 = arith.constant 0 : i32
    %42 = arith.index_cast %c0_i32 : i32 to index
    %c0_25 = arith.constant 0 : index
    %c0_26 = arith.constant 0 : index
    %43 = vector.load %arg11[%42, %c0_25, %c0_26] : memref<8x2x128xf32, #tpu.memory_space<vmem>>, vector<1x2x128xf32>
    %44 = vector.shape_cast %43 : vector<1x2x128xf32> to vector<2x128xf32>
    %c0_27 = arith.constant 0 : index
    %c0_28 = arith.constant 0 : index
    %45 = vector.load %arg2[%c0_27, %c0_28] : memref<128x128xf32, #tpu.memory_space<vmem>>, vector<128x128xf32>
    %cst_29 = arith.constant dense<0.000000e+00> : vector<2x128xf32>
    %46 = tpu.matmul %41, %45, %cst_29 {dimension_numbers = #tpu.dot_dimension_numbers<[1], [0], [0], [1], [0, 0, 1, 1], [], []>} : vector<2x128xf32>, vector<128x128xf32>, vector<2x128xf32> -> vector<2x128xf32>
    %47 = arith.addf %44, %46 : vector<2x128xf32>
    %48 = math.tanh %47 : vector<2x128xf32>
    %49 = tpu.concatenate %48, %41 in 1 : vector<2x128xf32>, vector<2x128xf32> -> vector<2x256xf32>
    %c0_30 = arith.constant 0 : index
    %c0_31 = arith.constant 0 : index
    %50 = vector.load %arg4[%c0_30, %c0_31] : memref<256x128xf32, #tpu.memory_space<vmem>>, vector<256x128xf32>
    %cst_32 = arith.constant dense<0.000000e+00> : vector<2x128xf32>
    %51 = tpu.matmul %49, %50, %cst_32 {dimension_numbers = #tpu.dot_dimension_numbers<[1], [0], [0], [1], [0, 0, 1, 1], [], []>} : vector<2x256xf32>, vector<256x128xf32>, vector<2x128xf32> -> vector<2x128xf32>
    %52 = arith.addf %51, %40 : vector<2x128xf32>
    %53 = math.tanh %52 : vector<2x128xf32>
    %54 = arith.addf %41, %53 : vector<2x128xf32>
    %c1_i32 = arith.constant 1 : i32
    %55 = arith.index_cast %c1_i32 : i32 to index
    %c0_33 = arith.constant 0 : index
    %c0_34 = arith.constant 0 : index
    %56 = vector.load %arg11[%55, %c0_33, %c0_34] : memref<8x2x128xf32, #tpu.memory_space<vmem>>, vector<1x2x128xf32>
    %57 = vector.shape_cast %56 : vector<1x2x128xf32> to vector<2x128xf32>
    %c0_35 = arith.constant 0 : index
    %c0_36 = arith.constant 0 : index
    %58 = vector.load %arg2[%c0_35, %c0_36] : memref<128x128xf32, #tpu.memory_space<vmem>>, vector<128x128xf32>
    %cst_37 = arith.constant dense<0.000000e+00> : vector<2x128xf32>
    %59 = tpu.matmul %48, %58, %cst_37 {dimension_numbers = #tpu.dot_dimension_numbers<[1], [0], [0], [1], [0, 0, 1, 1], [], []>} : vector<2x128xf32>, vector<128x128xf32>, vector<2x128xf32> -> vector<2x128xf32>
    %60 = arith.addf %57, %59 : vector<2x128xf32>
    %61 = math.tanh %60 : vector<2x128xf32>
    %62 = tpu.concatenate %61, %53 in 1 : vector<2x128xf32>, vector<2x128xf32> -> vector<2x256xf32>
    %c0_38 = arith.constant 0 : index
    %c0_39 = arith.constant 0 : index
    %63 = vector.load %arg4[%c0_38, %c0_39] : memref<256x128xf32, #tpu.memory_space<vmem>>, vector<256x128xf32>
    %cst_40 = arith.constant dense<0.000000e+00> : vector<2x128xf32>
    %64 = tpu.matmul %62, %63, %cst_40 {dimension_numbers = #tpu.dot_dimension_numbers<[1], [0], [0], [1], [0, 0, 1, 1], [], []>} : vector<2x256xf32>, vector<256x128xf32>, vector<2x128xf32> -> vector<2x128xf32>
    %65 = arith.addf %64, %40 : vector<2x128xf32>
    %66 = math.tanh %65 : vector<2x128xf32>
    %67 = arith.addf %54, %66 : vector<2x128xf32>
    %c2_i32 = arith.constant 2 : i32
    %68 = arith.index_cast %c2_i32 : i32 to index
    %c0_41 = arith.constant 0 : index
    %c0_42 = arith.constant 0 : index
    %69 = vector.load %arg11[%68, %c0_41, %c0_42] : memref<8x2x128xf32, #tpu.memory_space<vmem>>, vector<1x2x128xf32>
    %70 = vector.shape_cast %69 : vector<1x2x128xf32> to vector<2x128xf32>
    %c0_43 = arith.constant 0 : index
    %c0_44 = arith.constant 0 : index
    %71 = vector.load %arg2[%c0_43, %c0_44] : memref<128x128xf32, #tpu.memory_space<vmem>>, vector<128x128xf32>
    %cst_45 = arith.constant dense<0.000000e+00> : vector<2x128xf32>
    %72 = tpu.matmul %61, %71, %cst_45 {dimension_numbers = #tpu.dot_dimension_numbers<[1], [0], [0], [1], [0, 0, 1, 1], [], []>} : vector<2x128xf32>, vector<128x128xf32>, vector<2x128xf32> -> vector<2x128xf32>
    %73 = arith.addf %70, %72 : vector<2x128xf32>
    %74 = math.tanh %73 : vector<2x128xf32>
    %75 = tpu.concatenate %74, %66 in 1 : vector<2x128xf32>, vector<2x128xf32> -> vector<2x256xf32>
    %c0_46 = arith.constant 0 : index
    %c0_47 = arith.constant 0 : index
    %76 = vector.load %arg4[%c0_46, %c0_47] : memref<256x128xf32, #tpu.memory_space<vmem>>, vector<256x128xf32>
    %cst_48 = arith.constant dense<0.000000e+00> : vector<2x128xf32>
    %77 = tpu.matmul %75, %76, %cst_48 {dimension_numbers = #tpu.dot_dimension_numbers<[1], [0], [0], [1], [0, 0, 1, 1], [], []>} : vector<2x256xf32>, vector<256x128xf32>, vector<2x128xf32> -> vector<2x128xf32>
    %78 = arith.addf %77, %40 : vector<2x128xf32>
    %79 = math.tanh %78 : vector<2x128xf32>
    %80 = arith.addf %67, %79 : vector<2x128xf32>
    %c3_i32 = arith.constant 3 : i32
    %81 = arith.index_cast %c3_i32 : i32 to index
    %c0_49 = arith.constant 0 : index
    %c0_50 = arith.constant 0 : index
    %82 = vector.load %arg11[%81, %c0_49, %c0_50] : memref<8x2x128xf32, #tpu.memory_space<vmem>>, vector<1x2x128xf32>
    %83 = vector.shape_cast %82 : vector<1x2x128xf32> to vector<2x128xf32>
    %c0_51 = arith.constant 0 : index
    %c0_52 = arith.constant 0 : index
    %84 = vector.load %arg2[%c0_51, %c0_52] : memref<128x128xf32, #tpu.memory_space<vmem>>, vector<128x128xf32>
    %cst_53 = arith.constant dense<0.000000e+00> : vector<2x128xf32>
    %85 = tpu.matmul %74, %84, %cst_53 {dimension_numbers = #tpu.dot_dimension_numbers<[1], [0], [0], [1], [0, 0, 1, 1], [], []>} : vector<2x128xf32>, vector<128x128xf32>, vector<2x128xf32> -> vector<2x128xf32>
    %86 = arith.addf %83, %85 : vector<2x128xf32>
    %87 = math.tanh %86 : vector<2x128xf32>
    %88 = tpu.concatenate %87, %79 in 1 : vector<2x128xf32>, vector<2x128xf32> -> vector<2x256xf32>
    %c0_54 = arith.constant 0 : index
    %c0_55 = arith.constant 0 : index
    %89 = vector.load %arg4[%c0_54, %c0_55] : memref<256x128xf32, #tpu.memory_space<vmem>>, vector<256x128xf32>
    %cst_56 = arith.constant dense<0.000000e+00> : vector<2x128xf32>
    %90 = tpu.matmul %88, %89, %cst_56 {dimension_numbers = #tpu.dot_dimension_numbers<[1], [0], [0], [1], [0, 0, 1, 1], [], []>} : vector<2x256xf32>, vector<256x128xf32>, vector<2x128xf32> -> vector<2x128xf32>
    %91 = arith.addf %90, %40 : vector<2x128xf32>
    %92 = math.tanh %91 : vector<2x128xf32>
    %93 = arith.addf %80, %92 : vector<2x128xf32>
    %c4_i32 = arith.constant 4 : i32
    %94 = arith.index_cast %c4_i32 : i32 to index
    %c0_57 = arith.constant 0 : index
    %c0_58 = arith.constant 0 : index
    %95 = vector.load %arg11[%94, %c0_57, %c0_58] : memref<8x2x128xf32, #tpu.memory_space<vmem>>, vector<1x2x128xf32>
    %96 = vector.shape_cast %95 : vector<1x2x128xf32> to vector<2x128xf32>
    %c0_59 = arith.constant 0 : index
    %c0_60 = arith.constant 0 : index
    %97 = vector.load %arg2[%c0_59, %c0_60] : memref<128x128xf32, #tpu.memory_space<vmem>>, vector<128x128xf32>
    %cst_61 = arith.constant dense<0.000000e+00> : vector<2x128xf32>
    %98 = tpu.matmul %87, %97, %cst_61 {dimension_numbers = #tpu.dot_dimension_numbers<[1], [0], [0], [1], [0, 0, 1, 1], [], []>} : vector<2x128xf32>, vector<128x128xf32>, vector<2x128xf32> -> vector<2x128xf32>
    %99 = arith.addf %96, %98 : vector<2x128xf32>
    %100 = math.tanh %99 : vector<2x128xf32>
    %101 = tpu.concatenate %100, %92 in 1 : vector<2x128xf32>, vector<2x128xf32> -> vector<2x256xf32>
    %c0_62 = arith.constant 0 : index
    %c0_63 = arith.constant 0 : index
    %102 = vector.load %arg4[%c0_62, %c0_63] : memref<256x128xf32, #tpu.memory_space<vmem>>, vector<256x128xf32>
    %cst_64 = arith.constant dense<0.000000e+00> : vector<2x128xf32>
    %103 = tpu.matmul %101, %102, %cst_64 {dimension_numbers = #tpu.dot_dimension_numbers<[1], [0], [0], [1], [0, 0, 1, 1], [], []>} : vector<2x256xf32>, vector<256x128xf32>, vector<2x128xf32> -> vector<2x128xf32>
    %104 = arith.addf %103, %40 : vector<2x128xf32>
    %105 = math.tanh %104 : vector<2x128xf32>
    %106 = arith.addf %93, %105 : vector<2x128xf32>
    %c5_i32 = arith.constant 5 : i32
    %107 = arith.index_cast %c5_i32 : i32 to index
    %c0_65 = arith.constant 0 : index
    %c0_66 = arith.constant 0 : index
    %108 = vector.load %arg11[%107, %c0_65, %c0_66] : memref<8x2x128xf32, #tpu.memory_space<vmem>>, vector<1x2x128xf32>
    %109 = vector.shape_cast %108 : vector<1x2x128xf32> to vector<2x128xf32>
    %c0_67 = arith.constant 0 : index
    %c0_68 = arith.constant 0 : index
    %110 = vector.load %arg2[%c0_67, %c0_68] : memref<128x128xf32, #tpu.memory_space<vmem>>, vector<128x128xf32>
    %cst_69 = arith.constant dense<0.000000e+00> : vector<2x128xf32>
    %111 = tpu.matmul %100, %110, %cst_69 {dimension_numbers = #tpu.dot_dimension_numbers<[1], [0], [0], [1], [0, 0, 1, 1], [], []>} : vector<2x128xf32>, vector<128x128xf32>, vector<2x128xf32> -> vector<2x128xf32>
    %112 = arith.addf %109, %111 : vector<2x128xf32>
    %113 = math.tanh %112 : vector<2x128xf32>
    %114 = tpu.concatenate %113, %105 in 1 : vector<2x128xf32>, vector<2x128xf32> -> vector<2x256xf32>
    %c0_70 = arith.constant 0 : index
    %c0_71 = arith.constant 0 : index
    %115 = vector.load %arg4[%c0_70, %c0_71] : memref<256x128xf32, #tpu.memory_space<vmem>>, vector<256x128xf32>
    %cst_72 = arith.constant dense<0.000000e+00> : vector<2x128xf32>
    %116 = tpu.matmul %114, %115, %cst_72 {dimension_numbers = #tpu.dot_dimension_numbers<[1], [0], [0], [1], [0, 0, 1, 1], [], []>} : vector<2x256xf32>, vector<256x128xf32>, vector<2x128xf32> -> vector<2x128xf32>
    %117 = arith.addf %116, %40 : vector<2x128xf32>
    %118 = math.tanh %117 : vector<2x128xf32>
    %119 = arith.addf %106, %118 : vector<2x128xf32>
    %c6_i32 = arith.constant 6 : i32
    %120 = arith.index_cast %c6_i32 : i32 to index
    %c0_73 = arith.constant 0 : index
    %c0_74 = arith.constant 0 : index
    %121 = vector.load %arg11[%120, %c0_73, %c0_74] : memref<8x2x128xf32, #tpu.memory_space<vmem>>, vector<1x2x128xf32>
    %122 = vector.shape_cast %121 : vector<1x2x128xf32> to vector<2x128xf32>
    %c0_75 = arith.constant 0 : index
    %c0_76 = arith.constant 0 : index
    %123 = vector.load %arg2[%c0_75, %c0_76] : memref<128x128xf32, #tpu.memory_space<vmem>>, vector<128x128xf32>
    %cst_77 = arith.constant dense<0.000000e+00> : vector<2x128xf32>
    %124 = tpu.matmul %113, %123, %cst_77 {dimension_numbers = #tpu.dot_dimension_numbers<[1], [0], [0], [1], [0, 0, 1, 1], [], []>} : vector<2x128xf32>, vector<128x128xf32>, vector<2x128xf32> -> vector<2x128xf32>
    %125 = arith.addf %122, %124 : vector<2x128xf32>
    %126 = math.tanh %125 : vector<2x128xf32>
    %127 = tpu.concatenate %126, %118 in 1 : vector<2x128xf32>, vector<2x128xf32> -> vector<2x256xf32>
    %c0_78 = arith.constant 0 : index
    %c0_79 = arith.constant 0 : index
    %128 = vector.load %arg4[%c0_78, %c0_79] : memref<256x128xf32, #tpu.memory_space<vmem>>, vector<256x128xf32>
    %cst_80 = arith.constant dense<0.000000e+00> : vector<2x128xf32>
    %129 = tpu.matmul %127, %128, %cst_80 {dimension_numbers = #tpu.dot_dimension_numbers<[1], [0], [0], [1], [0, 0, 1, 1], [], []>} : vector<2x256xf32>, vector<256x128xf32>, vector<2x128xf32> -> vector<2x128xf32>
    %130 = arith.addf %129, %40 : vector<2x128xf32>
    %131 = math.tanh %130 : vector<2x128xf32>
    %132 = arith.addf %119, %131 : vector<2x128xf32>
    %c7_i32 = arith.constant 7 : i32
    %133 = arith.index_cast %c7_i32 : i32 to index
    %c0_81 = arith.constant 0 : index
    %c0_82 = arith.constant 0 : index
    %134 = vector.load %arg11[%133, %c0_81, %c0_82] : memref<8x2x128xf32, #tpu.memory_space<vmem>>, vector<1x2x128xf32>
    %135 = vector.shape_cast %134 : vector<1x2x128xf32> to vector<2x128xf32>
    %c0_83 = arith.constant 0 : index
    %c0_84 = arith.constant 0 : index
    %136 = vector.load %arg2[%c0_83, %c0_84] : memref<128x128xf32, #tpu.memory_space<vmem>>, vector<128x128xf32>
    %cst_85 = arith.constant dense<0.000000e+00> : vector<2x128xf32>
    %137 = tpu.matmul %126, %136, %cst_85 {dimension_numbers = #tpu.dot_dimension_numbers<[1], [0], [0], [1], [0, 0, 1, 1], [], []>} : vector<2x128xf32>, vector<128x128xf32>, vector<2x128xf32> -> vector<2x128xf32>
    %138 = arith.addf %135, %137 : vector<2x128xf32>
    %139 = math.tanh %138 : vector<2x128xf32>
    %140 = tpu.concatenate %139, %131 in 1 : vector<2x128xf32>, vector<2x128xf32> -> vector<2x256xf32>
    %c0_86 = arith.constant 0 : index
    %c0_87 = arith.constant 0 : index
    %141 = vector.load %arg4[%c0_86, %c0_87] : memref<256x128xf32, #tpu.memory_space<vmem>>, vector<256x128xf32>
    %cst_88 = arith.constant dense<0.000000e+00> : vector<2x128xf32>
    %142 = tpu.matmul %140, %141, %cst_88 {dimension_numbers = #tpu.dot_dimension_numbers<[1], [0], [0], [1], [0, 0, 1, 1], [], []>} : vector<2x256xf32>, vector<256x128xf32>, vector<2x128xf32> -> vector<2x128xf32>
    %143 = arith.addf %142, %40 : vector<2x128xf32>
    %144 = math.tanh %143 : vector<2x128xf32>
    %145 = arith.addf %132, %144 : vector<2x128xf32>
    %c8_i32 = arith.constant 8 : i32
    %cst_89 = arith.constant 1.250000e-01 : f32
    %146 = vector.broadcast %cst_89 : f32 to vector<2x128xf32>
    %147 = arith.mulf %145, %146 : vector<2x128xf32>
    %c0_90 = arith.constant 0 : index
    %c0_91 = arith.constant 0 : index
    %148 = vector.load %arg6[%c0_90, %c0_91] : memref<128x128xf32, #tpu.memory_space<vmem>>, vector<128x128xf32>
    %cst_92 = arith.constant dense<0.000000e+00> : vector<2x128xf32>
    %149 = tpu.matmul %147, %148, %cst_92 {dimension_numbers = #tpu.dot_dimension_numbers<[1], [0], [0], [1], [0, 0, 1, 1], [], []>} : vector<2x128xf32>, vector<128x128xf32>, vector<2x128xf32> -> vector<2x128xf32>
    %c0_93 = arith.constant 0 : index
    %c0_94 = arith.constant 0 : index
    %150 = vector.load %arg7[%c0_93, %c0_94] : memref<1x128xf32, #tpu.memory_space<vmem>>, vector<1x128xf32>
    %151 = vector.broadcast %150 : vector<1x128xf32> to vector<2x128xf32>
    %152 = arith.addf %149, %151 : vector<2x128xf32>
    %cst_95 = arith.constant 0.000000e+00 : f32
    %153 = vector.broadcast %cst_95 : f32 to vector<2x128xf32>
    %154 = arith.maximumf %152, %153 : vector<2x128xf32>
    %c0_96 = arith.constant 0 : index
    %c0_97 = arith.constant 0 : index
    %155 = vector.load %arg8[%c0_96, %c0_97] : memref<1x128xf32, #tpu.memory_space<vmem>>, vector<1x128xf32>
    %156 = vector.broadcast %155 : vector<1x128xf32> to vector<2x128xf32>
    %157 = arith.mulf %154, %156 : vector<2x128xf32>
    %cst_98 = arith.constant dense<0.000000e+00> : vector<2xf32>
    %158 = vector.multi_reduction <add>, %157, %cst_98 [1] : vector<2x128xf32> to vector<2xf32>
    %159 = vector.shape_cast %158 : vector<2xf32> to vector<2x1xf32>
    %c0_99 = arith.constant 0 : index
    %c0_100 = arith.constant 0 : index
    %160 = vector.load %arg9[%c0_99, %c0_100] : memref<1x1xf32, #tpu.memory_space<vmem>>, vector<1x1xf32>
    %161 = vector.broadcast %160 : vector<1x1xf32> to vector<2x1xf32>
    %162 = arith.addf %159, %161 : vector<2x1xf32>
    %c0_101 = arith.constant 0 : index
    %c0_102 = arith.constant 0 : index
    %163 = vector.load %arg10[%c0_101, %c0_102] : memref<2x1xf32, #tpu.memory_space<vmem>>, vector<2x1xf32>
    tpu.vector_store %arg10[%c0_101, %c0_102], %162 {strides = array<i32>} : memref<2x1xf32, #tpu.memory_space<vmem>>, vector<2x1xf32>,
    return
  }
}

</mosaic_0001>

<bundles_post_ra>
// kernel: baseline_lstm_forward.1
= control target key start
LH: loop header
LB: loop body
LE: loop exit
PB: predicated region body
PF: predicated region fallthrough
CT: control target
= control target key end

     0   :  { %v2833_v3 = vmov 0.0|0.0   ;;  %vm2834_vm0 = vmmov 0   ;;  %v2835_v4 = vmov 0.0   ;;  %vm1470_vm1 = vcmask 1041408   ;;  %s3501_s1 = inlined_call_operand.vmem [shape: f32[128,128], index: 1, kind: input, shape index: {}]   ;;  %s3502_s2 = inlined_call_operand.vmem [shape: f32[128,128], index: 2, kind: input, shape index: {}]   ;;  %s3503_s0 = inlined_call_operand.vmem [shape: f32[16,128], index: 0, kind: input, shape index: {}]   ;;  %s3504_s4 = inlined_call_operand.vmem [shape: f32[256,128], index: 4, kind: input, shape index: {}]   ;;  %s3505_s3 = inlined_call_operand.vmem [shape: f32[1,128], index: 3, kind: input, shape index: {}]   ;;  %s3506_s5 = inlined_call_operand.vmem [shape: f32[1,128], index: 5, kind: input, shape index: {}]   ;;  %s3507_s6 = inlined_call_operand.vmem [shape: f32[128,128], index: 6, kind: input, shape index: {}]   ;;  %s3508_s9 = inlined_call_operand.<no memory space> [shape: f32[1,1], index: 9, kind: input, shape index: {}]   ;;  %s3509_s7 = inlined_call_operand.vmem [shape: f32[1,128], index: 7, kind: input, shape index: {}]   ;;  %s3510_s8 = inlined_call_operand.vmem [shape: f32[1,128], index: 8, kind: input, shape index: {}]   ;;  %s3511_s10 = inlined_call_operand.vmem [shape: f32[2,1], index: 10, kind: output, shape index: {}]  }
   0x1   :  { %v39_v0 = vld [vmem:[%s3501_s1] sm:$0xff]  ;;  %v40_v1 = vld [vmem:[%s3501_s1 + $0x8] sm:$0xff]  ;;  %v41_v2 = vld [vmem:[%s3501_s1 + $0x10] sm:$0xff]  ;;  %2326 = vmatprep.subr.bf16.mxu1 %v2833_v3  ;;  %2011 = vmatprep.mubr.msk.f32.mxu1 %vm2834_vm0, %v2835_v4  ;;  %vm1482_vm2 = vcmask 1024  }
   0x2   :  { %v2294_v5 = vpack.c.bf16 %v40_v1, %v39_v0  ;;  %v42_v6 = vld [vmem:[%s3501_s1 + $0x18] sm:$0xff]  ;;  %v43_v7 = vld [vmem:[%s3501_s1 + $0x20] sm:$0xff]  ;;  %v44_v9 = vld [vmem:[%s3501_s1 + $0x28] sm:$0xff] }
   0x3   :  { %v2298_v8 = vpack.c.bf16 %v42_v6, %v41_v2  ;;  %v160_v10 = vld [vmem:[%s3502_s2] sm:$0xff]  ;;  %v161_v11 = vld [vmem:[%s3502_s2 + $0x8] sm:$0xff]  ;;  %v162_v13 = vld [vmem:[%s3502_s2 + $0x10] sm:$0xff]  ;;  %v2302_v15 = vpack.c.bf16 %v44_v9, %v43_v7 }
   0x4   :  { %2295 = vmatprep.subr.bf16.mxu0 %v2294_v5  ;;  %v2918_v12 = vpack.c.bf16 %v161_v11, %v160_v10  ;;  %v163_v14 = vld [vmem:[%s3502_s2 + $0x18] sm:$0xff]  ;;  %v45_v16 = vld [vmem:[%s3501_s1 + $0x30] sm:$0xff]  ;;  %v164_v19 = vld [vmem:[%s3502_s2 + $0x20] sm:$0xff] }
   0x5   :  { %2297 = vmatpush3.bf16.msra.mxu0 %v2294_v5  ;;  %v2930_v17 = vpack.c.bf16 %v163_v14, %v162_v13  ;;  %v46_v18 = vld [vmem:[%s3501_s1 + $0x38] sm:$0xff]  ;;  %v165_v20 = vld [vmem:[%s3502_s2 + $0x28] sm:$0xff]  ;;  %v37_v21 = vld [vmem:[%s3503_s0] sm:$0xff] }
   0x6   :  { %2299 = vmatprep.subr.bf16.mxu0 %v2298_v8  ;;  %2328 = vmatpush3.bf16.msra.mxu1 %v2918_v12  ;;  %v2306_v22 = vpack.c.bf16 %v46_v18, %v45_v16  ;;  %v47_v23 = vld [vmem:[%s3501_s1 + $0x40] sm:$0xff]  ;;  %v2949_v24 = vpack.c.bf16 %v165_v20, %v164_v19  ;;  %v48_v25 = vld [vmem:[%s3501_s1 + $0x48] sm:$0xff]  ;;  %v166_v26 = vld [vmem:[%s3502_s2 + $0x30] sm:$0xff] }
   0x7   :  { %2329 = vmatprep.subr.bf16.mxu1 %v2833_v3  ;;  %v167_v27 = vld [vmem:[%s3502_s2 + $0x38] sm:$0xff]  ;;  %1976 = vmatprep.mubr.f32.mxu0 %v37_v21  ;;  %v2310_v28 = vpack.c.bf16 %v48_v25, %v47_v23  ;;  %v49_v29 = vld [vmem:[%s3501_s1 + $0x50] sm:$0xff]  ;;  %v168_v32 = vld [vmem:[%s3502_s2 + $0x40] sm:$0xff] }
   0x8   :  { %v2965_v30 = vpack.c.bf16 %v167_v27, %v166_v26  ;;  %v50_v31 = vld [vmem:[%s3501_s1 + $0x58] sm:$0xff]  ;;  %v169_v33 = vld [vmem:[%s3502_s2 + $0x48] sm:$0xff]  ;;  %v51_v35 = vld [vmem:[%s3501_s1 + $0x60] sm:$0xff] }
   0x9   :  { %2301 = vmatpush3.bf16.msra.mxu0 %v2298_v8  ;;  %v2314_v34 = vpack.c.bf16 %v50_v31, %v49_v29  ;;  %v2981_v36 = vpack.c.bf16 %v169_v33, %v168_v32  ;;  %v52_v37 = vld [vmem:[%s3501_s1 + $0x68] sm:$0xff]  ;;  %v170_v38 = vld [vmem:[%s3502_s2 + $0x50] sm:$0xff]  ;;  %v171_v39 = vld [vmem:[%s3502_s2 + $0x58] sm:$0xff] }
   0xa   :  { %2303 = vmatprep.subr.bf16.mxu0 %v2302_v15  ;;  %2331 = vmatpush3.bf16.msra.mxu1 %v2930_v17  ;;  %v2318_v40 = vpack.c.bf16 %v52_v37, %v51_v35  ;;  %v53_v41 = vld [vmem:[%s3501_s1 + $0x70] sm:$0xff]  ;;  %v2997_v42 = vpack.c.bf16 %v171_v39, %v170_v38  ;;  %v54_v43 = vld [vmem:[%s3501_s1 + $0x78] sm:$0xff]  ;;  %v172_v44 = vld [vmem:[%s3502_s2 + $0x60] sm:$0xff] }
   0xb   :  { %2332 = vmatprep.subr.bf16.mxu1 %v2833_v3  ;;  %v173_v45 = vld [vmem:[%s3502_s2 + $0x68] sm:$0xff]  ;;  %v2322_v46 = vpack.c.bf16 %v54_v43, %v53_v41  ;;  %v174_v48 = vld [vmem:[%s3502_s2 + $0x70] sm:$0xff]  ;;  %v175_v49 = vld [vmem:[%s3502_s2 + $0x78] sm:$0xff] }
   0xc   :  { %v3010_v47 = vpack.c.bf16 %v173_v45, %v172_v44  ;;  %v264_v50 = vld [vmem:[%s3504_s4 + $0x80] sm:$0xff]  ;;  %v265_v51 = vld [vmem:[%s3504_s4 + $0x88] sm:$0xff]  ;;  %v3026_v52 = vpack.c.bf16 %v175_v49, %v174_v48  ;;  %v266_v56 = vld [vmem:[%s3504_s4 + $0x90] sm:$0xff] }
   0xd   :  { %2305 = vmatpush3.bf16.msra.mxu0 %v2302_v15  ;;  %v3028_v53 = vpack.c.bf16 %v265_v51, %v264_v50  ;;  %v248_v54 = vld [vmem:[%s3504_s4] sm:$0xff]  ;;  %v249_v55 = vld [vmem:[%s3504_s4 + $0x8] sm:$0xff]  ;;  %v267_v57 = vld [vmem:[%s3504_s4 + $0x98] sm:$0xff] }
   0xe   :  { %2307 = vmatprep.subr.bf16.mxu0 %v2306_v22  ;;  %2334 = vmatpush3.bf16.msra.mxu1 %v2949_v24  ;;  %v38_v58 = vld [vmem:[%s3503_s0 + $0x8] sm:$0xff]  ;;  %v3046_v59 = vpack.c.bf16 %v249_v55, %v248_v54  ;;  %v3050_v60 = vpack.c.bf16 %v267_v57, %v266_v56  ;;  %v250_v61 = vld [vmem:[%s3504_s4 + $0x10] sm:$0xff]  ;;  %v251_v62 = vld [vmem:[%s3504_s4 + $0x18] sm:$0xff] }
   0xf   :  { %2335 = vmatprep.subr.bf16.mxu1 %v2833_v3  ;;  %v3061_v63 = vpack.c.bf16 %v251_v62, %v250_v61  ;;  %v268_v0 = vld [vmem:[%s3504_s4 + $0xa0] sm:$0xff]  ;;  %v269_v1 = vld [vmem:[%s3504_s4 + $0xa8] sm:$0xff]  ;;  %v270_v8 = vld [vmem:[%s3504_s4 + $0xb0] sm:$0xff] }
  0x10   :  { %v3090_v2 = vpack.c.bf16 %v269_v1, %v268_v0  ;;  %v252_v5 = vld [vmem:[%s3504_s4 + $0x20] sm:$0xff]  ;;  %v253_v6 = vld [vmem:[%s3504_s4 + $0x28] sm:$0xff]  ;;  %v271_v9 = vld [vmem:[%s3504_s4 + $0xb8] sm:$0xff] }
  0x11   :  { %2309 = vmatpush3.bf16.msra.mxu0 %v2306_v22  ;;  %v3098_v7 = vpack.c.bf16 %v253_v6, %v252_v5  ;;  %v3108_v10 = vpack.c.bf16 %v271_v9, %v270_v8  ;;  %v254_v11 = vld [vmem:[%s3504_s4 + $0x30] sm:$0xff]  ;;  %v255_v13 = vld [vmem:[%s3504_s4 + $0x38] sm:$0xff]  ;;  %v272_v15 = vld [vmem:[%s3504_s4 + $0xc0] sm:$0xff] }
  0x12   :  { %2311 = vmatprep.subr.bf16.mxu0 %v2310_v28  ;;  %2337 = vmatpush3.bf16.msra.mxu1 %v2965_v30  ;;  %v3116_v14 = vpack.c.bf16 %v255_v13, %v254_v11  ;;  %v273_v16 = vld [vmem:[%s3504_s4 + $0xc8] sm:$0xff]  ;;  %v256_v19 = vld [vmem:[%s3504_s4 + $0x40] sm:$0xff]  ;;  %v274_v22 = vld [vmem:[%s3504_s4 + $0xd0] sm:$0xff] }
  0x13   :  { %2338 = vmatprep.subr.bf16.mxu1 %v2833_v3  ;;  %v3125_v18 = vpack.c.bf16 %v273_v16, %v272_v15  ;;  %v257_v20 = vld [vmem:[%s3504_s4 + $0x48] sm:$0xff]  ;;  %v275_v23 = vld [vmem:[%s3504_s4 + $0xd8] sm:$0xff]  ;;  %v258_v26 = vld [vmem:[%s3504_s4 + $0x50] sm:$0xff] }
  0x14   :  { %v3135_v21 = vpack.c.bf16 %v257_v20, %v256_v19  ;;  %v3144_v25 = vpack.c.bf16 %v275_v23, %v274_v22  ;;  %v259_v27 = vld [vmem:[%s3504_s4 + $0x58] sm:$0xff]  ;;  %v276_v29 = vld [vmem:[%s3504_s4 + $0xe0] sm:$0xff]  ;;  %v277_v31 = vld [vmem:[%s3504_s4 + $0xe8] sm:$0xff] }
  0x15   :  { %2313 = vmatpush3.bf16.msra.mxu0 %v2310_v28  ;;  %v3152_v28 = vpack.c.bf16 %v259_v27, %v258_v26  ;;  %v260_v32 = vld [vmem:[%s3504_s4 + $0x60] sm:$0xff]  ;;  %v3165_v33 = vpack.c.bf16 %v277_v31, %v276_v29  ;;  %v278_v35 = vld [vmem:[%s3504_s4 + $0xf0] sm:$0xff]  ;;  %v279_v37 = vld [vmem:[%s3504_s4 + $0xf8] sm:$0xff] }
  0x16   :  { %2315 = vmatprep.subr.bf16.mxu0 %v2314_v34  ;;  %2340 = vmatpush3.bf16.msra.mxu1 %v2981_v36  ;;  %v3178_v39 = vpack.c.bf16 %v279_v37, %v278_v35  ;;  %v263_v41 = vld [vmem:[%s3504_s4 + $0x78] sm:$0xff]  ;;  %v1488_v44 = vld [vmem:[%s3505_s3] ss:$0 sm:$0xff] }
  0x17   :  { %2341 = vmatprep.subr.bf16.mxu1 %v2833_v3  ;;  %v3233_v0 = vld [vmem:[%s3506_s5] ss:$0 sm:$0xff] }
  0x19   :  { %2317 = vmatpush3.bf16.msra.mxu0 %v2314_v34  ;;  %v261_v34 = vld [vmem:[%s3504_s4 + $0x68] sm:$0xff] }
  0x1a   :  { %2319 = vmatprep.subr.bf16.mxu0 %v2318_v40  ;;  %2343 = vmatpush3.bf16.msra.mxu1 %v2997_v42  ;;  %v3176_v38 = vpack.c.bf16 %v261_v34, %v260_v32 }
  0x1b   :  { %2344 = vmatprep.subr.bf16.mxu1 %v2833_v3 }
  0x1d   :  { %2321 = vmatpush3.bf16.msra.mxu0 %v2318_v40  ;;  %v262_v40 = vld [vmem:[%s3504_s4 + $0x70] sm:$0xff] }
  0x1e   :  { %2323 = vmatprep.subr.bf16.mxu0 %v2322_v46  ;;  %2346 = vmatpush3.bf16.msra.mxu1 %v3010_v47  ;;  %v3188_v43 = vpack.c.bf16 %v263_v41, %v262_v40 }
  0x1f   :  { %2347 = vmatprep.subr.bf16.mxu1 %v2833_v3 }
  0x21   :  { %2325 = vmatpush3.bf16.msra.mxu0 %v2322_v46 }
  0x22   :  { %2349 = vmatpush3.bf16.msra.mxu1 %v3026_v52  ;;  %2351 = vmatprep.subr.bf16.mxu0 %v3028_v53 }
  0x23   :  { %2382 = vmatprep.subr.bf16.mxu1 %v2833_v3 }
  0x24   :  { %1977 = vmatmul.mubr.f32.vlgmr.msra.gmra.mrb[0].mxu0 %v38_v58 }
  0x25   :  { %2012 = vmatmul.mubr.f32.vlgmr.msra.gmra.mrb[0].mxu1 %v2835_v4  ;;  %2353 = vmatpush3.bf16.msra.mxu0 %v3046_v59 }
  0x26   :  { %2384 = vmatpush3.bf16.msra.mxu1 %v2918_v12  ;;  %2355 = vmatprep.subr.bf16.mxu0 %v3050_v60 }
  0x27   :  { %2385 = vmatprep.subr.bf16.mxu1 %v2833_v3  ;;  %344 = vmatprep.mubr.f32.mxu0 %v2835_v4 }
  0x28   :  { %2046 = vmatprep.mubr.msk.f32.mxu1 %vm2834_vm0, %v2835_v4 }
  0x29   :  { %2357 = vmatpush3.bf16.msra.mxu0 %v3061_v63 }
  0x2a   :  { %2387 = vmatpush3.bf16.msra.mxu1 %v2930_v17  ;;  %2359 = vmatprep.subr.bf16.mxu0 %v3090_v2 }
  0x2b   :  { %2388 = vmatprep.subr.bf16.mxu1 %v2833_v3 }
  0x2d   :  { %2361 = vmatpush3.bf16.msra.mxu0 %v3098_v7 }
  0x2e   :  { %2390 = vmatpush3.bf16.msra.mxu1 %v2949_v24  ;;  %2363 = vmatprep.subr.bf16.mxu0 %v3108_v10 }
  0x2f   :  { %2391 = vmatprep.subr.bf16.mxu1 %v2833_v3 }
  0x31   :  { %2365 = vmatpush3.bf16.msra.mxu0 %v3116_v14 }
  0x32   :  { %2393 = vmatpush3.bf16.msra.mxu1 %v2965_v30  ;;  %2367 = vmatprep.subr.bf16.mxu0 %v3125_v18 }
  0x33   :  { %2394 = vmatprep.subr.bf16.mxu1 %v2833_v3 }
  0x35   :  { %2369 = vmatpush3.bf16.msra.mxu0 %v3135_v21 }
  0x36   :  { %2396 = vmatpush3.bf16.msra.mxu1 %v2981_v36  ;;  %2371 = vmatprep.subr.bf16.mxu0 %v3144_v25 }
  0x37   :  { %2397 = vmatprep.subr.bf16.mxu1 %v2833_v3 }
  0x39   :  { %2373 = vmatpush3.bf16.msra.mxu0 %v3152_v28 }
  0x3a   :  { %2399 = vmatpush3.bf16.msra.mxu1 %v2997_v42  ;;  %2375 = vmatprep.subr.bf16.mxu0 %v3165_v33 }
  0x3b   :  { %2400 = vmatprep.subr.bf16.mxu1 %v2833_v3 }
  0x3d   :  { %2377 = vmatpush3.bf16.msra.mxu0 %v3176_v38 }
  0x3e   :  { %2402 = vmatpush3.bf16.msra.mxu1 %v3010_v47  ;;  %2379 = vmatprep.subr.bf16.mxu0 %v3178_v39 }
  0x3f   :  { %2403 = vmatprep.subr.bf16.mxu1 %v2833_v3 }
  0x41   :  { %2381 = vmatpush3.bf16.msra.mxu0 %v3188_v43 }
  0x42   :  { %2405 = vmatpush3.bf16.msra.mxu1 %v3026_v52  ;;  %2407 = vmatprep.subr.bf16.mxu0 %v3028_v53 }
  0x43   :  { %2438 = vmatprep.subr.bf16.mxu1 %v2833_v3 }
  0xf7   :  { %v1978_v45 = vpop.f32.mrb[0].mxu0 }
  0xf8   :  { %v134_v46 = vadd.f32 %v1978_v45, %v1488_v44  ;;  %v128_v48 = vpop.f32.mrb[1].mxu0  ;;  %v242_v49 = vpop.f32.mrb[0].mxu1 }
  0xf9   :  { %v129_v50 = vadd.f32 %v1488_v44, %v128_v48  ;;  %v2013_v51 = vpop.f32.mrb[1].mxu1 }
  0xfa   :  { %145 = vst [vmem:[#allocation2 + $0x8] ss:$4 sps:$4 sm:$0xff] %v134_v46  }
  0xfb   :  { %137 = vst [vmem:[#allocation2] ss:$4 sps:$4 sm:$0xff] %v129_v50  }
 0x101   :  { %v787_v50 = vld [vmem:[#allocation2 + $0x8] sm:$0x3] }
 0x102   :  { %v159_v54 = vld [vmem:[#allocation2] sm:$0x3]  ;;  %v352_v58 = vld [vmem:[#allocation2 + $0x2] sm:$0x3]  ;;  %v497_v13 = vld [vmem:[#allocation2 + $0x4] sm:$0x3] }
 0x103   :  { %v246_v55 = vadd.f32 %v242_v49, %v159_v54  ;;  %v642_v31 = vld [vmem:[#allocation2 + $0x6] sm:$0x3] }
 0x105   :  { %2801 = vtanh.f32 %v246_v55 }
 0x10f   :  { %v2802_v56 = vpop.eup %2801 }
 0x110   :  { %345 = vmatmul.mubr.f32.vlgmr.msra.gmra.mrb[2].mxu0 %v2802_v56  ;;  %2047 = vmatmul.mubr.f32.vlgmr.msra.gmra.mrb[2].mxu1 %v2802_v56 }
 0x111   :  { %2440 = vmatpush3.bf16.msra.mxu1 %v2918_v12  ;;  %2409 = vmatpush3.bf16.msra.mxu0 %v3046_v59 }
 0x112   :  { %2441 = vmatprep.subr.bf16.mxu1 %v2833_v3  ;;  %2411 = vmatprep.subr.bf16.mxu0 %v3050_v60 }
 0x113   :  { %2081 = vmatprep.mubr.msk.f32.mxu1 %vm2834_vm0, %v2835_v4 }
 0x115   :  { %2443 = vmatpush3.bf16.msra.mxu1 %v2930_v17  ;;  %2413 = vmatpush3.bf16.msra.mxu0 %v3061_v63 }
 0x116   :  { %2444 = vmatprep.subr.bf16.mxu1 %v2833_v3  ;;  %2415 = vmatprep.subr.bf16.mxu0 %v3090_v2 }
 0x119   :  { %2446 = vmatpush3.bf16.msra.mxu1 %v2949_v24  ;;  %2417 = vmatpush3.bf16.msra.mxu0 %v3098_v7 }
 0x11a   :  { %2447 = vmatprep.subr.bf16.mxu1 %v2833_v3  ;;  %2419 = vmatprep.subr.bf16.mxu0 %v3108_v10 }
 0x11d   :  { %2449 = vmatpush3.bf16.msra.mxu1 %v2965_v30  ;;  %2421 = vmatpush3.bf16.msra.mxu0 %v3116_v14 }
 0x11e   :  { %2450 = vmatprep.subr.bf16.mxu1 %v2833_v3  ;;  %2423 = vmatprep.subr.bf16.mxu0 %v3125_v18 }
 0x121   :  { %2452 = vmatpush3.bf16.msra.mxu1 %v2981_v36  ;;  %2425 = vmatpush3.bf16.msra.mxu0 %v3135_v21 }
 0x122   :  { %2453 = vmatprep.subr.bf16.mxu1 %v2833_v3  ;;  %2427 = vmatprep.subr.bf16.mxu0 %v3144_v25 }
 0x125   :  { %2455 = vmatpush3.bf16.msra.mxu1 %v2997_v42  ;;  %2429 = vmatpush3.bf16.msra.mxu0 %v3152_v28 }
 0x126   :  { %2456 = vmatprep.subr.bf16.mxu1 %v2833_v3  ;;  %2431 = vmatprep.subr.bf16.mxu0 %v3165_v33 }
 0x129   :  { %2458 = vmatpush3.bf16.msra.mxu1 %v3010_v47  ;;  %2433 = vmatpush3.bf16.msra.mxu0 %v3176_v38 }
 0x12a   :  { %2459 = vmatprep.subr.bf16.mxu1 %v2833_v3  ;;  %2435 = vmatprep.subr.bf16.mxu0 %v3178_v39 }
 0x12d   :  { %2461 = vmatpush3.bf16.msra.mxu1 %v3026_v52  ;;  %2437 = vmatpush3.bf16.msra.mxu0 %v3188_v43 }
 0x12e   :  { %2494 = vmatprep.subr.bf16.mxu1 %v2833_v3  ;;  %2463 = vmatprep.subr.bf16.mxu0 %v3028_v53 }
 0x1e3   :  { %v1560_v57 = vpop.f32.mrb[2].mxu0  ;;  %v419_v61 = vpop.f32.mrb[2].mxu1 }
 0x1e4   :  { %v423_v62 = vadd.f32 %v419_v61, %v352_v58  ;;  %v1561_v1 = vpop.f32.mrb[3].mxu0  ;;  %v2048_v5 = vpop.f32.mrb[3].mxu1 }
 0x1e5   :  { %v1562_v6 = vadd.f32 %v1561_v1, %v1560_v57 }
 0x1e6   :  { %2803 = vtanh.f32 %v423_v62 }
 0x1e7   :  { %v347_v8 = vadd.f32 %v1562_v6, %v3233_v0  ;;  %v932_v6 = vld [vmem:[#allocation2 + $0xa] sm:$0x3] }
 0x1e9   :  { %2805 = vtanh.f32 %v347_v8 }
 0x1f0   :  { %v2804_v9 = vpop.eup %2803 }
 0x1f1   :  { %2082 = vmatmul.mubr.f32.vlgmr.msra.gmra.mrb[4].mxu1 %v2804_v9 }
 0x1f2   :  { %2496 = vmatpush3.bf16.msra.mxu1 %v2918_v12  ;;  %2116 = vmatprep.mubr.msk.f32.mxu1 %vm2834_vm0, %v2835_v4 }
 0x1f3   :  { %v3239_v11 = vpop.eup %2805  ;;  %2497 = vmatprep.subr.bf16.mxu1 %v2833_v3 }
 0x1f4   :  { %489 = vmatprep.mubr.f32.mxu0 %v3239_v11 }
 0x1f5   :  { %490 = vmatmul.mubr.f32.vlgmr.msra.gmra.mrb[4].mxu0 %v2804_v9 }
 0x1f6   :  { %2499 = vmatpush3.bf16.msra.mxu1 %v2930_v17  ;;  %2465 = vmatpush3.bf16.msra.mxu0 %v3046_v59 }
 0x1f7   :  { %2500 = vmatprep.subr.bf16.mxu1 %v2833_v3  ;;  %2467 = vmatprep.subr.bf16.mxu0 %v3050_v60 }
 0x1fa   :  { %2502 = vmatpush3.bf16.msra.mxu1 %v2949_v24  ;;  %2469 = vmatpush3.bf16.msra.mxu0 %v3061_v63 }
 0x1fb   :  { %2503 = vmatprep.subr.bf16.mxu1 %v2833_v3  ;;  %2471 = vmatprep.subr.bf16.mxu0 %v3090_v2 }
 0x1fe   :  { %2505 = vmatpush3.bf16.msra.mxu1 %v2965_v30  ;;  %2473 = vmatpush3.bf16.msra.mxu0 %v3098_v7 }
 0x1ff   :  { %2506 = vmatprep.subr.bf16.mxu1 %v2833_v3  ;;  %2475 = vmatprep.subr.bf16.mxu0 %v3108_v10 }
 0x202   :  { %2508 = vmatpush3.bf16.msra.mxu1 %v2981_v36  ;;  %2477 = vmatpush3.bf16.msra.mxu0 %v3116_v14 }
 0x203   :  { %2509 = vmatprep.subr.bf16.mxu1 %v2833_v3  ;;  %2479 = vmatprep.subr.bf16.mxu0 %v3125_v18 }
 0x206   :  { %2511 = vmatpush3.bf16.msra.mxu1 %v2997_v42  ;;  %2481 = vmatpush3.bf16.msra.mxu0 %v3135_v21 }
 0x207   :  { %2512 = vmatprep.subr.bf16.mxu1 %v2833_v3  ;;  %2483 = vmatprep.subr.bf16.mxu0 %v3144_v25 }
 0x20a   :  { %2514 = vmatpush3.bf16.msra.mxu1 %v3010_v47  ;;  %2485 = vmatpush3.bf16.msra.mxu0 %v3152_v28 }
 0x20b   :  { %2515 = vmatprep.subr.bf16.mxu1 %v2833_v3  ;;  %2487 = vmatprep.subr.bf16.mxu0 %v3165_v33 }
 0x20e   :  { %2517 = vmatpush3.bf16.msra.mxu1 %v3026_v52  ;;  %2489 = vmatpush3.bf16.msra.mxu0 %v3176_v38 }
 0x20f   :  { %2491 = vmatprep.subr.bf16.mxu0 %v3178_v39  ;;  %2550 = vmatprep.subr.bf16.mxu1 %v2833_v3 }
 0x212   :  { %2493 = vmatpush3.bf16.msra.mxu0 %v3188_v43 }
 0x213   :  { %2519 = vmatprep.subr.bf16.mxu0 %v3028_v53 }
 0x2c4   :  { %v564_v15 = vpop.f32.mrb[4].mxu1 }
 0x2c5   :  { %v568_v16 = vadd.f32 %v564_v15, %v497_v13  ;;  %v2083_v19 = vpop.f32.mrb[5].mxu1 }
 0x2c7   :  { %2807 = vtanh.f32 %v568_v16 }
 0x2c8   :  { %v1612_v20 = vpop.f32.mrb[4].mxu0 }
 0x2c9   :  { %v1613_v22 = vpop.f32.mrb[5].mxu0 }
 0x2ca   :  { %v1614_v23 = vadd.f32 %v1613_v22, %v1612_v20 }
 0x2cc   :  { %v492_v26 = vadd.f32 %v1614_v23, %v3233_v0 }
 0x2ce   :  { %2809 = vtanh.f32 %v492_v26 }
 0x2d1   :  { %v2808_v27 = vpop.eup %2807 }
 0x2d2   :  { %2117 = vmatmul.mubr.f32.vlgmr.msra.gmra.mrb[6].mxu1 %v2808_v27 }
 0x2d3   :  { %2552 = vmatpush3.bf16.msra.mxu1 %v2918_v12  ;;  %2151 = vmatprep.mubr.msk.f32.mxu1 %vm2834_vm0, %v2835_v4 }
 0x2d4   :  { %2553 = vmatprep.subr.bf16.mxu1 %v2833_v3 }
 0x2d7   :  { %2555 = vmatpush3.bf16.msra.mxu1 %v2930_v17 }
 0x2d8   :  { %v2810_v29 = vpop.eup %2809  ;;  %2556 = vmatprep.subr.bf16.mxu1 %v2833_v3 }
 0x2d9   :  { %634 = vmatprep.mubr.f32.mxu0 %v2810_v29  ;;  %v496_v46 = vadd.f32 %v2810_v29, %v3239_v11 }
 0x2da   :  { %635 = vmatmul.mubr.f32.vlgmr.msra.gmra.mrb[6].mxu0 %v2808_v27 }
 0x2db   :  { %2558 = vmatpush3.bf16.msra.mxu1 %v2949_v24  ;;  %2521 = vmatpush3.bf16.msra.mxu0 %v3046_v59 }
 0x2dc   :  { %2559 = vmatprep.subr.bf16.mxu1 %v2833_v3  ;;  %2523 = vmatprep.subr.bf16.mxu0 %v3050_v60 }
 0x2df   :  { %2561 = vmatpush3.bf16.msra.mxu1 %v2965_v30  ;;  %2525 = vmatpush3.bf16.msra.mxu0 %v3061_v63 }
 0x2e0   :  { %2562 = vmatprep.subr.bf16.mxu1 %v2833_v3  ;;  %2527 = vmatprep.subr.bf16.mxu0 %v3090_v2 }
 0x2e3   :  { %2564 = vmatpush3.bf16.msra.mxu1 %v2981_v36  ;;  %2529 = vmatpush3.bf16.msra.mxu0 %v3098_v7 }
 0x2e4   :  { %2565 = vmatprep.subr.bf16.mxu1 %v2833_v3  ;;  %2531 = vmatprep.subr.bf16.mxu0 %v3108_v10 }
 0x2e7   :  { %2567 = vmatpush3.bf16.msra.mxu1 %v2997_v42  ;;  %2533 = vmatpush3.bf16.msra.mxu0 %v3116_v14 }
 0x2e8   :  { %2568 = vmatprep.subr.bf16.mxu1 %v2833_v3  ;;  %2535 = vmatprep.subr.bf16.mxu0 %v3125_v18 }
 0x2eb   :  { %2570 = vmatpush3.bf16.msra.mxu1 %v3010_v47  ;;  %2537 = vmatpush3.bf16.msra.mxu0 %v3135_v21 }
 0x2ec   :  { %2571 = vmatprep.subr.bf16.mxu1 %v2833_v3  ;;  %2539 = vmatprep.subr.bf16.mxu0 %v3144_v25 }
 0x2ef   :  { %2573 = vmatpush3.bf16.msra.mxu1 %v3026_v52  ;;  %2541 = vmatpush3.bf16.msra.mxu0 %v3152_v28 }
 0x2f0   :  { %2543 = vmatprep.subr.bf16.mxu0 %v3165_v33  ;;  %2606 = vmatprep.subr.bf16.mxu1 %v2833_v3 }
 0x2f3   :  { %2545 = vmatpush3.bf16.msra.mxu0 %v3176_v38 }
 0x2f4   :  { %2547 = vmatprep.subr.bf16.mxu0 %v3178_v39 }
 0x2f7   :  { %2549 = vmatpush3.bf16.msra.mxu0 %v3188_v43 }
 0x2f8   :  { %2575 = vmatprep.subr.bf16.mxu0 %v3028_v53 }
 0x3a5   :  { %v709_v32 = vpop.f32.mrb[6].mxu1 }
 0x3a6   :  { %v713_v34 = vadd.f32 %v709_v32, %v642_v31  ;;  %v2118_v35 = vpop.f32.mrb[7].mxu1 }
 0x3a7   :  { %v1374_v35 = vld [vmem:[%s3507_s6 + $0x30] sm:$0xff] }
 0x3a8   :  { %2811 = vtanh.f32 %v713_v34 }
 0x3ad   :  { %v1664_v37 = vpop.f32.mrb[6].mxu0 }
 0x3ae   :  { %v1665_v40 = vpop.f32.mrb[7].mxu0 }
 0x3af   :  { %v1666_v41 = vadd.f32 %v1665_v40, %v1664_v37  ;;  %v1375_v37 = vld [vmem:[%s3507_s6 + $0x38] sm:$0xff] }
 0x3b0   :  { %v2784_v40 = vpack.c.bf16 %v1375_v37, %v1374_v35 }
 0x3b1   :  { %v637_v44 = vadd.f32 %v1666_v41, %v3233_v0  ;;  %v1376_v41 = vld [vmem:[%s3507_s6 + $0x40] sm:$0xff] }
 0x3b2   :  { %v2812_v45 = vpop.eup %2811 }
 0x3b3   :  { %2813 = vtanh.f32 %v637_v44  ;;  %2152 = vmatmul.mubr.f32.vlgmr.msra.gmra.mrb[8].mxu1 %v2812_v45  ;;  %v1377_v44 = vld [vmem:[%s3507_s6 + $0x48] sm:$0xff] }
 0x3b4   :  { %2608 = vmatpush3.bf16.msra.mxu1 %v2918_v12  ;;  %2186 = vmatprep.mubr.msk.f32.mxu1 %vm2834_vm0, %v2835_v4 }
 0x3b5   :  { %2609 = vmatprep.subr.bf16.mxu1 %v2833_v3 }
 0x3b8   :  { %2611 = vmatpush3.bf16.msra.mxu1 %v2930_v17 }
 0x3b9   :  { %2612 = vmatprep.subr.bf16.mxu1 %v2833_v3 }
 0x3bc   :  { %2614 = vmatpush3.bf16.msra.mxu1 %v2949_v24 }
 0x3bd   :  { %v2814_v48 = vpop.eup %2813  ;;  %2615 = vmatprep.subr.bf16.mxu1 %v2833_v3 }
 0x3be   :  { %v641_v49 = vadd.f32 %v2814_v48, %v496_v46  ;;  %779 = vmatprep.mubr.f32.mxu0 %v2814_v48  ;;  %v1378_v46 = vld [vmem:[%s3507_s6 + $0x50] sm:$0xff]  ;;  %v1379_v48 = vld [vmem:[%s3507_s6 + $0x58] sm:$0xff] }
 0x3bf   :  { %780 = vmatmul.mubr.f32.vlgmr.msra.gmra.mrb[8].mxu0 %v2812_v45  ;;  %v2787_v45 = vpack.c.bf16 %v1377_v44, %v1376_v41 }
 0x3c0   :  { %2617 = vmatpush3.bf16.msra.mxu1 %v2965_v30  ;;  %2577 = vmatpush3.bf16.msra.mxu0 %v3046_v59 }
 0x3c1   :  { %2618 = vmatprep.subr.bf16.mxu1 %v2833_v3  ;;  %2579 = vmatprep.subr.bf16.mxu0 %v3050_v60 }
 0x3c4   :  { %2620 = vmatpush3.bf16.msra.mxu1 %v2981_v36  ;;  %2581 = vmatpush3.bf16.msra.mxu0 %v3061_v63 }
 0x3c5   :  { %2621 = vmatprep.subr.bf16.mxu1 %v2833_v3  ;;  %2583 = vmatprep.subr.bf16.mxu0 %v3090_v2 }
 0x3c8   :  { %2623 = vmatpush3.bf16.msra.mxu1 %v2997_v42  ;;  %2585 = vmatpush3.bf16.msra.mxu0 %v3098_v7 }
 0x3c9   :  { %2624 = vmatprep.subr.bf16.mxu1 %v2833_v3  ;;  %2587 = vmatprep.subr.bf16.mxu0 %v3108_v10 }
 0x3cc   :  { %2626 = vmatpush3.bf16.msra.mxu1 %v3010_v47  ;;  %2589 = vmatpush3.bf16.msra.mxu0 %v3116_v14 }
 0x3cd   :  { %2627 = vmatprep.subr.bf16.mxu1 %v2833_v3  ;;  %2591 = vmatprep.subr.bf16.mxu0 %v3125_v18 }
 0x3d0   :  { %2629 = vmatpush3.bf16.msra.mxu1 %v3026_v52  ;;  %2593 = vmatpush3.bf16.msra.mxu0 %v3135_v21 }
 0x3d1   :  { %2595 = vmatprep.subr.bf16.mxu0 %v3144_v25  ;;  %2662 = vmatprep.subr.bf16.mxu1 %v2833_v3 }
 0x3d4   :  { %2597 = vmatpush3.bf16.msra.mxu0 %v3152_v28 }
 0x3d5   :  { %2599 = vmatprep.subr.bf16.mxu0 %v3165_v33 }
 0x3d8   :  { %2601 = vmatpush3.bf16.msra.mxu0 %v3176_v38 }
 0x3d9   :  { %2603 = vmatprep.subr.bf16.mxu0 %v3178_v39 }
 0x3dc   :  { %2605 = vmatpush3.bf16.msra.mxu0 %v3188_v43 }
 0x3dd   :  { %2631 = vmatprep.subr.bf16.mxu0 %v3028_v53 }
 0x486   :  { %v854_v51 = vpop.f32.mrb[8].mxu1 }
 0x487   :  { %v858_v54 = vadd.f32 %v854_v51, %v787_v50  ;;  %v2153_v55 = vpop.f32.mrb[9].mxu1  ;;  %v1380_v50 = vld [vmem:[%s3507_s6 + $0x60] sm:$0xff]  ;;  %v1381_v51 = vld [vmem:[%s3507_s6 + $0x68] sm:$0xff] }
 0x488   :  { %v1382_v55 = vld [vmem:[%s3507_s6 + $0x70] sm:$0xff] }
 0x489   :  { %2815 = vtanh.f32 %v858_v54  ;;  %v2793_v54 = vpack.c.bf16 %v1381_v51, %v1380_v50 }
 0x492   :  { %v1716_v56 = vpop.f32.mrb[8].mxu0 }
 0x493   :  { %v2816_v57 = vpop.eup %2815  ;;  %v1717_v58 = vpop.f32.mrb[9].mxu0 }
 0x494   :  { %v1718_v61 = vadd.f32 %v1717_v58, %v1716_v56  ;;  %2187 = vmatmul.mubr.f32.vlgmr.msra.gmra.mrb[10].mxu1 %v2816_v57  ;;  %v1383_v56 = vld [vmem:[%s3507_s6 + $0x78] sm:$0xff] }
 0x495   :  { %2664 = vmatpush3.bf16.msra.mxu1 %v2918_v12  ;;  %2221 = vmatprep.mubr.msk.f32.mxu1 %vm2834_vm0, %v2835_v4 }
 0x496   :  { %v782_v62 = vadd.f32 %v1718_v61, %v3233_v0  ;;  %2665 = vmatprep.subr.bf16.mxu1 %v2833_v3 }
 0x498   :  { %2817 = vtanh.f32 %v782_v62 }
 0x499   :  { %2667 = vmatpush3.bf16.msra.mxu1 %v2930_v17 }
 0x49a   :  { %2668 = vmatprep.subr.bf16.mxu1 %v2833_v3 }
 0x49d   :  { %2670 = vmatpush3.bf16.msra.mxu1 %v2949_v24 }
 0x49e   :  { %2671 = vmatprep.subr.bf16.mxu1 %v2833_v3 }
 0x4a1   :  { %2673 = vmatpush3.bf16.msra.mxu1 %v2965_v30 }
 0x4a2   :  { %v2818_v1 = vpop.eup %2817  ;;  %2674 = vmatprep.subr.bf16.mxu1 %v2833_v3 }
 0x4a3   :  { %v786_v5 = vadd.f32 %v2818_v1, %v641_v49  ;;  %924 = vmatprep.mubr.f32.mxu0 %v2818_v1  ;;  %v2790_v49 = vpack.c.bf16 %v1379_v48, %v1378_v46 }
 0x4a4   :  { %925 = vmatmul.mubr.f32.vlgmr.msra.gmra.mrb[10].mxu0 %v2816_v57  ;;  %v2796_v57 = vpack.c.bf16 %v1383_v56, %v1382_v55 }
 0x4a5   :  { %2676 = vmatpush3.bf16.msra.mxu1 %v2981_v36  ;;  %2633 = vmatpush3.bf16.msra.mxu0 %v3046_v59 }
 0x4a6   :  { %2677 = vmatprep.subr.bf16.mxu1 %v2833_v3  ;;  %2635 = vmatprep.subr.bf16.mxu0 %v3050_v60 }
 0x4a9   :  { %2679 = vmatpush3.bf16.msra.mxu1 %v2997_v42  ;;  %2637 = vmatpush3.bf16.msra.mxu0 %v3061_v63 }
 0x4aa   :  { %2680 = vmatprep.subr.bf16.mxu1 %v2833_v3  ;;  %2639 = vmatprep.subr.bf16.mxu0 %v3090_v2 }
 0x4ad   :  { %2682 = vmatpush3.bf16.msra.mxu1 %v3010_v47  ;;  %2641 = vmatpush3.bf16.msra.mxu0 %v3098_v7 }
 0x4ae   :  { %2683 = vmatprep.subr.bf16.mxu1 %v2833_v3  ;;  %2643 = vmatprep.subr.bf16.mxu0 %v3108_v10 }
 0x4b1   :  { %2685 = vmatpush3.bf16.msra.mxu1 %v3026_v52  ;;  %2645 = vmatpush3.bf16.msra.mxu0 %v3116_v14 }
 0x4b2   :  { %2647 = vmatprep.subr.bf16.mxu0 %v3125_v18  ;;  %2718 = vmatprep.subr.bf16.mxu1 %v2833_v3 }
 0x4b5   :  { %2649 = vmatpush3.bf16.msra.mxu0 %v3135_v21 }
 0x4b6   :  { %2651 = vmatprep.subr.bf16.mxu0 %v3144_v25 }
 0x4b9   :  { %2653 = vmatpush3.bf16.msra.mxu0 %v3152_v28 }
 0x4ba   :  { %2655 = vmatprep.subr.bf16.mxu0 %v3165_v33 }
 0x4bd   :  { %2657 = vmatpush3.bf16.msra.mxu0 %v3176_v38 }
 0x4be   :  { %2659 = vmatprep.subr.bf16.mxu0 %v3178_v39 }
 0x4c1   :  { %2661 = vmatpush3.bf16.msra.mxu0 %v3188_v43 }
 0x4c2   :  { %2687 = vmatprep.subr.bf16.mxu0 %v3028_v53 }
 0x567   :  { %v999_v8 = vpop.f32.mrb[10].mxu1 }
 0x568   :  { %v1003_v9 = vadd.f32 %v999_v8, %v932_v6  ;;  %v2188_v11 = vpop.f32.mrb[11].mxu1 }
 0x56a   :  { %2819 = vtanh.f32 %v1003_v9  ;;  %v15_v9 = vstv %s3508_s9 }
 0x56b   :  { %16 = vst [vmem:[#allocation3] sm:$0x1] %v15_v9 }
 0x574   :  { %v2820_v13 = vpop.eup %2819 }
 0x575   :  { %2222 = vmatmul.mubr.f32.vlgmr.msra.gmra.mrb[12].mxu1 %v2820_v13 }
 0x576   :  { %2720 = vmatpush3.bf16.msra.mxu1 %v2918_v12  ;;  %2256 = vmatprep.mubr.msk.f32.mxu1 %vm2834_vm0, %v2835_v4 }
 0x577   :  { %v1768_v15 = vpop.f32.mrb[10].mxu0  ;;  %2721 = vmatprep.subr.bf16.mxu1 %v2833_v3 }
 0x578   :  { %v1769_v16 = vpop.f32.mrb[11].mxu0 }
 0x579   :  { %v1770_v19 = vadd.f32 %v1769_v16, %v1768_v15 }
 0x57a   :  { %2723 = vmatpush3.bf16.msra.mxu1 %v2930_v17 }
 0x57b   :  { %v927_v20 = vadd.f32 %v1770_v19, %v3233_v0  ;;  %2724 = vmatprep.subr.bf16.mxu1 %v2833_v3 }
 0x57d   :  { %2821 = vtanh.f32 %v927_v20 }
 0x57e   :  { %2726 = vmatpush3.bf16.msra.mxu1 %v2949_v24  ;;  %v1077_v24 = vld [vmem:[#allocation2 + $0xc] sm:$0x3] }
 0x57f   :  { %2727 = vmatprep.subr.bf16.mxu1 %v2833_v3 }
 0x582   :  { %2729 = vmatpush3.bf16.msra.mxu1 %v2965_v30 }
 0x583   :  { %2730 = vmatprep.subr.bf16.mxu1 %v2833_v3 }
 0x586   :  { %2732 = vmatpush3.bf16.msra.mxu1 %v2981_v36 }
 0x587   :  { %v2822_v12 = vpop.eup %2821  ;;  %2733 = vmatprep.subr.bf16.mxu1 %v2833_v3 }
 0x588   :  { %1069 = vmatprep.mubr.f32.mxu0 %v2822_v12  ;;  %v931_v17 = vadd.f32 %v2822_v12, %v786_v5  ;;  %v1492_v12 = vld [vmem:[#allocation3] ss:$0 sm:$0xff] }
 0x589   :  { %1070 = vmatmul.mubr.f32.vlgmr.msra.gmra.mrb[12].mxu0 %v2820_v13 }
 0x58a   :  { %2735 = vmatpush3.bf16.msra.mxu1 %v2997_v42  ;;  %2689 = vmatpush3.bf16.msra.mxu0 %v3046_v59 }
 0x58b   :  { %2736 = vmatprep.subr.bf16.mxu1 %v2833_v3  ;;  %2691 = vmatprep.subr.bf16.mxu0 %v3050_v60 }
 0x58e   :  { %2738 = vmatpush3.bf16.msra.mxu1 %v3010_v47  ;;  %2693 = vmatpush3.bf16.msra.mxu0 %v3061_v63 }
 0x58f   :  { %2739 = vmatprep.subr.bf16.mxu1 %v2833_v3  ;;  %2695 = vmatprep.subr.bf16.mxu0 %v3090_v2 }
 0x592   :  { %2741 = vmatpush3.bf16.msra.mxu1 %v3026_v52  ;;  %2697 = vmatpush3.bf16.msra.mxu0 %v3098_v7 }
 0x593   :  { %2699 = vmatprep.subr.bf16.mxu0 %v3108_v10  ;;  %2774 = vmatprep.subr.bf16.mxu1 %v2833_v3 }
 0x596   :  { %2701 = vmatpush3.bf16.msra.mxu0 %v3116_v14 }
 0x597   :  { %2703 = vmatprep.subr.bf16.mxu0 %v3125_v18 }
 0x59a   :  { %2705 = vmatpush3.bf16.msra.mxu0 %v3135_v21 }
 0x59b   :  { %2707 = vmatprep.subr.bf16.mxu0 %v3144_v25 }
 0x59e   :  { %2709 = vmatpush3.bf16.msra.mxu0 %v3152_v28 }
 0x59f   :  { %2711 = vmatprep.subr.bf16.mxu0 %v3165_v33 }
 0x5a2   :  { %2713 = vmatpush3.bf16.msra.mxu0 %v3176_v38 }
 0x5a3   :  { %2715 = vmatprep.subr.bf16.mxu0 %v3178_v39 }
 0x5a6   :  { %2717 = vmatpush3.bf16.msra.mxu0 %v3188_v43 }
 0x5a7   :  { %2743 = vmatprep.subr.bf16.mxu0 %v3028_v53  ;;  %v1369_v53 = vld [vmem:[%s3507_s6 + $0x8] sm:$0xff] }
 0x648   :  { %v1144_v30 = vpop.f32.mrb[12].mxu1 }
 0x649   :  { %v1148_v36 = vadd.f32 %v1144_v30, %v1077_v24  ;;  %v2223_v42 = vpop.f32.mrb[13].mxu1 }
 0x64b   :  { %2823 = vtanh.f32 %v1148_v36 }
 0x655   :  { %v2824_v47 = vpop.eup %2823 }
 0x656   :  { %2257 = vmatmul.mubr.f32.vlgmr.msra.gmra.mrb[14].mxu1 %v2824_v47 }
 0x657   :  { %2291 = vmatprep.mubr.msk.f32.mxu1 %vm2834_vm0, %v2835_v4  ;;  %v1368_v4 = vld [vmem:[%s3507_s6] sm:$0xff] }
 0x65c   :  { %v1820_v52 = vpop.f32.mrb[12].mxu0 }
 0x65d   :  { %v1821_v22 = vpop.f32.mrb[13].mxu0 }
 0x65e   :  { %v1822_v23 = vadd.f32 %v1821_v22, %v1820_v52 }
 0x660   :  { %v1072_v26 = vadd.f32 %v1822_v23, %v3233_v0 }
 0x662   :  { %2825 = vtanh.f32 %v1072_v26 }
 0x66c   :  { %v2826_v27 = vpop.eup %2825 }
 0x66d   :  { %1214 = vmatprep.mubr.f32.mxu0 %v2826_v27  ;;  %v1076_v29 = vadd.f32 %v2826_v27, %v931_v17 }
 0x66e   :  { %1215 = vmatmul.mubr.f32.vlgmr.msra.gmra.mrb[14].mxu0 %v2824_v47 }
 0x66f   :  { %2745 = vmatpush3.bf16.msra.mxu0 %v3046_v59  ;;  %v1370_v59 = vld [vmem:[%s3507_s6 + $0x10] sm:$0xff] }
 0x670   :  { %2747 = vmatprep.subr.bf16.mxu0 %v3050_v60  ;;  %v2775_v60 = vpack.c.bf16 %v1369_v53, %v1368_v4 }
 0x672   :  { %2776 = vmatpush3.bf16.msra.mxu1 %v2775_v60 }
 0x673   :  { %2749 = vmatpush3.bf16.msra.mxu0 %v3061_v63  ;;  %v1371_v63 = vld [vmem:[%s3507_s6 + $0x18] sm:$0xff]  ;;  %2777 = vmatprep.subr.bf16.mxu1 %v2833_v3 }
 0x674   :  { %2751 = vmatprep.subr.bf16.mxu0 %v3090_v2  ;;  %v2778_v2 = vpack.c.bf16 %v1371_v63, %v1370_v59 }
 0x676   :  { %2779 = vmatpush3.bf16.msra.mxu1 %v2778_v2 }
 0x677   :  { %2753 = vmatpush3.bf16.msra.mxu0 %v3098_v7  ;;  %v1372_v7 = vld [vmem:[%s3507_s6 + $0x20] sm:$0xff]  ;;  %2780 = vmatprep.subr.bf16.mxu1 %v2833_v3 }
 0x678   :  { %2755 = vmatprep.subr.bf16.mxu0 %v3108_v10  ;;  %v1373_v10 = vld [vmem:[%s3507_s6 + $0x28] sm:$0xff] }
 0x67b   :  { %2757 = vmatpush3.bf16.msra.mxu0 %v3116_v14  ;;  %v2781_v14 = vpack.c.bf16 %v1373_v10, %v1372_v7 }
 0x67c   :  { %2759 = vmatprep.subr.bf16.mxu0 %v3125_v18 }
 0x67d   :  { %2782 = vmatpush3.bf16.msra.mxu1 %v2781_v14 }
 0x67e   :  { %2783 = vmatprep.subr.bf16.mxu1 %v2833_v3 }
 0x67f   :  { %2761 = vmatpush3.bf16.msra.mxu0 %v3135_v21 }
 0x680   :  { %2763 = vmatprep.subr.bf16.mxu0 %v3144_v25 }
 0x681   :  { %2785 = vmatpush3.bf16.msra.mxu1 %v2784_v40 }
 0x682   :  { %2786 = vmatprep.subr.bf16.mxu1 %v2833_v3 }
 0x683   :  { %2765 = vmatpush3.bf16.msra.mxu0 %v3152_v28 }
 0x684   :  { %2767 = vmatprep.subr.bf16.mxu0 %v3165_v33  ;;  %v1222_v33 = vld [vmem:[#allocation2 + $0xe] sm:$0x3] }
 0x685   :  { %2788 = vmatpush3.bf16.msra.mxu1 %v2787_v45 }
 0x686   :  { %2789 = vmatprep.subr.bf16.mxu1 %v2833_v3 }
 0x687   :  { %2769 = vmatpush3.bf16.msra.mxu0 %v3176_v38 }
 0x688   :  { %2771 = vmatprep.subr.bf16.mxu0 %v3178_v39 }
 0x689   :  { %2791 = vmatpush3.bf16.msra.mxu1 %v2790_v49 }
 0x68a   :  { %2792 = vmatprep.subr.bf16.mxu1 %v2833_v3 }
 0x68b   :  { %2773 = vmatpush3.bf16.msra.mxu0 %v3188_v43 }
 0x68d   :  { %2794 = vmatpush3.bf16.msra.mxu1 %v2793_v54 }
 0x68e   :  { %2795 = vmatprep.subr.bf16.mxu1 %v2833_v3  ;;  %v1490_v3 = vld [vmem:[%s3509_s7] ss:$0 sm:$0xff] }
 0x691   :  { %2797 = vmatpush3.bf16.msra.mxu1 %v2796_v57 }
 0x729   :  { %v1289_v18 = vpop.f32.mrb[14].mxu1 }
 0x72a   :  { %v2258_v21 = vpop.f32.mrb[15].mxu1  ;;  %v1293_v39 = vadd.f32 %v1289_v18, %v1222_v33 }
 0x741   :  { %v1872_v25 = vpop.f32.mrb[14].mxu0 }
 0x742   :  { %v1873_v28 = vpop.f32.mrb[15].mxu0 }
 0x743   :  { %v1874_v38 = vadd.f32 %v1873_v28, %v1872_v25 }
 0x745   :  { %v1217_v43 = vadd.f32 %v1874_v38, %v3233_v0 }
 0x747   :  { %2827 = vtanh.f32 %v1217_v43 }
 0x748   :  { %2829 = vtanh.f32 %v1293_v39 }
 0x751   :  { %v2828_v31 = vpop.eup %2827 }
 0x752   :  { %v2830_v32 = vpop.eup %2829  ;;  %1359 = vmatprep.mubr.f32.mxu0 %v2828_v31  ;;  %v1221_v34 = vadd.f32 %v2828_v31, %v1076_v29 }
 0x753   :  { %1360 = vmatmul.mubr.f32.vlgmr.msra.gmra.mrb[16].mxu0 %v2830_v32 }
 0x826   :  { %v1924_v58 = vpop.f32.mrb[16].mxu0 }
 0x827   :  { %v1925_v61 = vpop.f32.mrb[17].mxu0 }
 0x828   :  { %v1926_v62 = vadd.f32 %v1925_v61, %v1924_v58 }
 0x82a   :  { %v1362_v1 = vadd.f32 %v1926_v62, %v3233_v0  ;;  %v1491_v0 = vld [vmem:[%s3510_s8] ss:$0 sm:$0xff] }
 0x82c   :  { %2831 = vtanh.f32 %v1362_v1 }
 0x836   :  { %v2832_v5 = vpop.eup %2831 }
 0x837   :  { %v1366_v6 = vadd.f32 %v2832_v5, %v1221_v34 }
 0x839   :  { %v1367_v8 = vmul.f32 0.125, %v1366_v6 }
 0x83b   :  { %2292 = vmatmul.mubr.f32.vlgmr.msra.gmra.mrb[16].mxu1 %v1367_v8 }
 0x90e   :  { %v1457_v11 = vpop.f32.mrb[16].mxu1 }
 0x90f   :  { %v1458_v13 = vadd.f32 %v1490_v3, %v1457_v11  ;;  %v2293_v15 = vpop.f32.mrb[17].mxu1 }
 0x911   :  { %v1461_v16 = vmax.f32 %v1458_v13, 0.0 }
 0x913   :  { %v1469_v19 = vmul.f32 %v1491_v0, %v1461_v16 }
 0x915   :  { %v1471_v20 = vsel %vm1470_vm1, %v1469_v19, 0.0 }
 0x916   :  { %1472 = vadd.xlane.f32.xlu0 %v1471_v20 }
 0x9a3   :  { %v1473_v17 = vpop.xlane.xlu0 %1472 }
 0x9a4   :  { %v1481_v24 = vadd.f32 %v1492_v12, %v1473_v17 }
 0x9a6   :  { %1483 = vst.msk [vmem:[%s3511_s10] sm:$0x3] %vm1482_vm2, %v1481_v24 }

</bundles_post_ra>
